<compile_context>
chip_gen: v7x
topology: tpu7x:2x2x1
jax: 0.10.0
libtpu: 0.0.40
codegen_flags: <defaults>
</compile_context>

<pallas_src>
import jax
import jax.numpy as jnp
from jax import lax
from jax.experimental import pallas as pl
from jax.experimental.pallas import tpu as pltpu
from jax.scipy.special import erfinv

_LANE = 128
_PER_BUFFER_BYTES = 4 * 1024 * 1024    # per-tile VMEM target (Pallas double-buffers)
_VMEM_LIMIT_BYTES = 48 * 1024 * 1024   # < v7x 64 MiB physical, ample for the working set


def _proxy_norm_kernel(x_ref, g_ref, b_ref, shift_ref, o_ref):
    # x_ref/o_ref: (ROW_TILE, HW_TILE) tile; params: (ROW_TILE, 1) f32 (broadcast over lanes).
    # f32 compute path is safe on all generations (no-op cast for f32 inputs).
    x = x_ref[...].astype(jnp.float32)
    z = jnp.maximum(g_ref[...] * x + b_ref[...], 0.0)   # folded affine + ReLU
    o_ref[...] = (z - shift_ref[...]).astype(o_ref.dtype)


def proxy_norm_2d(x, gamma, beta, *, eps=0.03, bias=False):
    """ProxyNorm2d forward. gamma/beta have shape (1, C, 1, 1) like the PyTorch params."""
    if x.ndim == 3:            # mirror torch's unsqueeze(0) for 3-D input
        x = x[None]
    B, C, H, W = x.shape
    HW = H * W
    rows = B * C
    dtype = x.dtype
    itemsize = jnp.dtype(dtype).itemsize

    # ---- proxy statistics: tiny, parameter-only (plain-JAX glue, not a kernel) ----
    proxy_y = jnp.sqrt(2.0) * erfinv(
        2.0 * (jnp.arange(C, dtype=jnp.float32) + eps) / float(C) - 1.0)      # (C,)
    g1 = gamma.reshape(C).astype(jnp.float32)
    b1 = beta.reshape(C).astype(jnp.float32)
    proxy_z = jnp.maximum(proxy_y[:, None] * g1[None, :] + b1[None, :], 0.0)  # (C, C)
    mean = jnp.mean(proxy_z, axis=0)                                          # (C,)
    # NOTE: ddof=1 (unbiased) matches torch.var(unbiased=not bias); C==1 with
    # ddof=1 yields NaN exactly like the PyTorch module would.
    var = jnp.var(proxy_z, axis=0, ddof=0 if bias else 1)
    istd = lax.rsqrt(var + eps)   # > 0 because of +eps; required for the folding below

    # Fold istd into the affine params (valid since istd > 0 and ReLU is
    # positively homogeneous): (relu(g*x+b) - mean)*istd
    #                        == relu((g*istd)*x + b*istd) - mean*istd
    g2 = g1 * istd
    b2 = b1 * istd
    shift = mean * istd

    # Per-channel params tiled to the row-flattened (B*C,) layout (a few KiB).
    g_rows = jnp.tile(g2, B).reshape(rows, 1)
    b_rows = jnp.tile(b2, B).reshape(rows, 1)
    s_rows = jnp.tile(shift, B).reshape(rows, 1)

    # ---- tiling: row-flattened 2-D view, lane-dense, ragged last blocks masked ----
    sublane = {4: 8, 2: 16, 1: 32}.get(itemsize, 8)
    rows_ceil = -(-rows // sublane) * sublane
    HW_ceil = -(-HW // _LANE) * _LANE

    max_row_tile = max(sublane,
                       (_PER_BUFFER_BYTES // (HW_ceil * itemsize)) // sublane * sublane)
    ROW_TILE = min(rows_ceil, max_row_tile)
    max_hw_tile = max(_LANE,
                      (_PER_BUFFER_BYTES // (ROW_TILE * itemsize)) // _LANE * _LANE)
    HW_TILE = min(HW_ceil, max_hw_tile)

    n_r = -(-rows // ROW_TILE)
    n_s = -(-HW // HW_TILE)
    # v7x has 2 TensorCores; give both work when the shape allows it.
    if n_r * n_s == 1:
        if HW_ceil >= 2 * _LANE:
            HW_TILE = -(-(HW_ceil // 2) // _LANE) * _LANE
            n_s = -(-HW // HW_TILE)
        elif ROW_TILE >= 2 * sublane:
            ROW_TILE = -(-(ROW_TILE // 2) // sublane) * sublane
            n_r = -(-rows // ROW_TILE)

    x2 = x.reshape(rows, HW)   # contiguous merge: free, no copy

    data_spec = pl.BlockSpec((ROW_TILE, HW_TILE), lambda ri, si: (ri, si))
    param_spec = pl.BlockSpec((ROW_TILE, 1), lambda ri, si: (ri, 0))

    n_elem = rows * HW
    cost = pl.CostEstimate(
        flops=4 * n_elem,
        transcendentals=0,
        bytes_accessed=2 * n_elem * itemsize + 3 * rows * 4,
    )

    out = pl.pallas_call(
        _proxy_norm_kernel,
        out_shape=jax.ShapeDtypeStruct((rows, HW), dtype),
        grid=(n_r, n_s),
        in_specs=[data_spec, param_spec, param_spec, param_spec],
        out_specs=data_spec,
        compiler_params=pltpu.CompilerParams(
            dimension_semantics=("parallel", "parallel"),
            vmem_limit_bytes=_VMEM_LIMIT_BYTES,
        ),
        cost_estimate=cost,
    )(x2, g_rows, b_rows, s_rows)

    return out.reshape(B, C, H, W)


def _reference(x, gamma, beta, *, eps=0.03, bias=False):
    """Pure-JAX transcription of ProxyNorm2d.forward for verification."""
    if x.ndim == 3:
        x = x[None]
    C = gamma.shape[1]
    z = jnp.maximum(gamma * x + beta, 0.0)
    proxy_y = (jnp.sqrt(2.0) * erfinv(
        2.0 * (jnp.arange(C, dtype=jnp.float32) + eps) / float(C) - 1.0)
    ).reshape(C, 1, 1, 1)
    proxy_z = jnp.maximum(gamma * proxy_y + beta, 0.0)       # (C, C, 1, 1)
    mean = jnp.mean(proxy_z, axis=0, keepdims=True)
    var = jnp.var(proxy_z, axis=0, keepdims=True, ddof=0 if bias else 1)
    std = lax.rsqrt(var + eps)
    return (z - mean) * std


if __name__ == "__main__":
    key = jax.random.PRNGKey(0)
    k_x, k_g, k_b, k_x2 = jax.random.split(key, 4)

    # Primary shape (NCHW) consistent with the module.
    B, C, H, W = 2, 4, 16, 16
    x = jax.random.normal(k_x, (B, C, H, W), dtype=jnp.float32)

    # 1) Parameters exactly as in ProxyNorm2d.__init__ (gamma=1, beta=0).
    beta0 = jnp.zeros((1, C, 1, 1), dtype=jnp.float32)
    gamma0 = jnp.ones((1, C, 1, 1), dtype=jnp.float32)
    out0 = jax.block_until_ready(proxy_norm_2d(x, gamma0, beta0, eps=0.03, bias=False))
    ref0 = _reference(x, gamma0, beta0, eps=0.03, bias=False)
    assert out0.shape == (B, C, H, W)
    assert out0.dtype == x.dtype
    assert jnp.allclose(out0, ref0, atol=1e-5, rtol=1e-5), "mismatch vs reference (init params)"

    # 2) Non-trivial params to exercise the folded-affine path.
    gamma1 = (1.0 + 0.1 * jax.random.normal(k_g, (1, C, 1, 1))).astype(jnp.float32)
    beta1 = (0.1 * jax.random.normal(k_b, (1, C, 1, 1))).astype(jnp.float32)
    out1 = jax.block_until_ready(proxy_norm_2d(x, gamma1, beta1, eps=0.03, bias=False))
    ref1 = _reference(x, gamma1, beta1, eps=0.03, bias=False)
    assert jnp.allclose(out1, ref1, atol=1e-5, rtol=1e-5), "mismatch vs reference (random params)"

    # 3) Ragged shapes (C not a sublane multiple, HW not a lane multiple) hit the
    #    masked last-block path — no host-side pad or output slice involved.
    B2, C2, H2, W2 = 2, 3, 7, 7
    xr = jax.random.normal(k_x2, (B2, C2, H2, W2), dtype=jnp.float32)
    gammar = (1.0 + 0.1 * jax.random.normal(k_g, (1, C2, 1, 1))).astype(jnp.float32)
    betar = (0.1 * jax.random.normal(k_b, (1, C2, 1, 1))).astype(jnp.float32)
    outr = jax.block_until_ready(proxy_norm_2d(xr, gammar, betar, eps=0.03, bias=False))
    refr = _reference(xr, gammar, betar, eps=0.03, bias=False)
    assert outr.shape == (B2, C2, H2, W2)
    assert jnp.allclose(outr, refr, atol=1e-5, rtol=1e-5), "mismatch vs reference (ragged shapes)"

    print("KERNEL_OK")
</pallas_src>

<mosaic_0001>
module attributes {stable_mosaic.version = 11 : i64} {
  func.func @_proxy_norm_kernel(%arg0: i32, %arg1: i32, %arg2: memref<8x128xf32, #tpu.memory_space<vmem>>, %arg3: memref<8x1xf32, #tpu.memory_space<vmem>>, %arg4: memref<8x1xf32, #tpu.memory_space<vmem>>, %arg5: memref<8x1xf32, #tpu.memory_space<vmem>>, %arg6: memref<8x128xf32, #tpu.memory_space<vmem>>) attributes {dimension_semantics = [#tpu.dimension_semantics<parallel>, #tpu.dimension_semantics<parallel>], iteration_bounds = array<i64: 1, 2>, scalar_prefetch = 0 : i64, scratch_operands = 0 : i64, tpu.core_type = #tpu.core_type<tc>, window_params = [{transform_indices = @transform_0, window_bounds = array<i64: 8, 128>}, {transform_indices = @transform_1, window_bounds = array<i64: 8, 1>}, {transform_indices = @transform_2, window_bounds = array<i64: 8, 1>}, {transform_indices = @transform_3, window_bounds = array<i64: 8, 1>}, {transform_indices = @transform_4, window_bounds = array<i64: 8, 128>}]} {
    %c0 = arith.constant 0 : index
    %c0_0 = arith.constant 0 : index
    %0 = vector.load %arg2[%c0, %c0_0] : memref<8x128xf32, #tpu.memory_space<vmem>>, vector<8x128xf32>
    %c0_1 = arith.constant 0 : index
    %c0_2 = arith.constant 0 : index
    %1 = vector.load %arg3[%c0_1, %c0_2] : memref<8x1xf32, #tpu.memory_space<vmem>>, vector<8x1xf32>
    %2 = vector.broadcast %1 : vector<8x1xf32> to vector<8x128xf32>
    %3 = arith.mulf %2, %0 : vector<8x128xf32>
    %c0_3 = arith.constant 0 : index
    %c0_4 = arith.constant 0 : index
    %4 = vector.load %arg4[%c0_3, %c0_4] : memref<8x1xf32, #tpu.memory_space<vmem>>, vector<8x1xf32>
    %5 = vector.broadcast %4 : vector<8x1xf32> to vector<8x128xf32>
    %6 = arith.addf %3, %5 : vector<8x128xf32>
    %cst = arith.constant 0.000000e+00 : f32
    %7 = vector.broadcast %cst : f32 to vector<8x128xf32>
    %8 = arith.maximumf %6, %7 : vector<8x128xf32>
    %c0_5 = arith.constant 0 : index
    %c0_6 = arith.constant 0 : index
    %9 = vector.load %arg5[%c0_5, %c0_6] : memref<8x1xf32, #tpu.memory_space<vmem>>, vector<8x1xf32>
    %10 = vector.broadcast %9 : vector<8x1xf32> to vector<8x128xf32>
    %11 = arith.subf %8, %10 : vector<8x128xf32>
    %c0_7 = arith.constant 0 : index
    %c0_8 = arith.constant 0 : index
    %12 = vector.load %arg6[%c0_7, %c0_8] : memref<8x128xf32, #tpu.memory_space<vmem>>, vector<8x128xf32>
    tpu.vector_store %arg6[%c0_7, %c0_8], %11 {strides = array<i32>} : memref<8x128xf32, #tpu.memory_space<vmem>>, vector<8x128xf32>,
    return
  }
  func.func @transform_0(%arg0: i32, %arg1: i32) -> (i32, i32) {
    %c0_i32 = arith.constant 0 : i32
    return %arg0, %arg1 : i32, i32
  }
  func.func @transform_1(%arg0: i32, %arg1: i32) -> (i32, i32) {
    %c0_i32 = arith.constant 0 : i32
    %c0_i32_0 = arith.constant 0 : i32
    return %arg0, %c0_i32 : i32, i32
  }
  func.func @transform_2(%arg0: i32, %arg1: i32) -> (i32, i32) {
    %c0_i32 = arith.constant 0 : i32
    %c0_i32_0 = arith.constant 0 : i32
    return %arg0, %c0_i32 : i32, i32
  }
  func.func @transform_3(%arg0: i32, %arg1: i32) -> (i32, i32) {
    %c0_i32 = arith.constant 0 : i32
    %c0_i32_0 = arith.constant 0 : i32
    return %arg0, %c0_i32 : i32, i32
  }
  func.func @transform_4(%arg0: i32, %arg1: i32) -> (i32, i32) {
    %c0_i32 = arith.constant 0 : i32
    return %arg0, %arg1 : i32, i32
  }
}

</mosaic_0001>

<bundles_post_ra>
// kernel: tpu_custom_call.1
= control target key start
LH: loop header
LB: loop body
LE: loop exit
PB: predicated region body
PF: predicated region fallthrough
CT: control target
= control target key end

     0   :  { %9 = vsyncpa [#allocation3], 0  ;;  %s732_s0 = inlined_call_operand.vmem [shape: f32[8,256], index: 0, kind: input, shape index: {}]   ;;  %s733_s1 = inlined_call_operand.vmem [shape: f32[8,1], index: 1, kind: input, shape index: {}]   ;;  %s734_s2 = inlined_call_operand.vmem [shape: f32[8,1], index: 2, kind: input, shape index: {}]   ;;  %s735_s3 = inlined_call_operand.vmem [shape: f32[8,1], index: 3, kind: input, shape index: {}]   ;;  %s736_s4 = inlined_call_operand.hbm [shape: f32[8,256], index: 4, kind: output, shape index: {}]  }
   0x1   :  { %11 = vsyncpa [#allocation3 + $0x1], 0  ;;  %s611_s15 = smov 0   ;;  %s613_s16 = smov 0  }
   0x2   :  { %s615_s17 = smov 0   ;;  %s617_s18 = smov 0  }
   0x3   :  { %s619_s19 = smov 0   ;;  %s621_s20 = smov 0  }
   0x4 LB: > { %s432_s21 = sadd.s32 4294967295, %s582_s20   ;;  %s433_s22 = sadd.s32 4294967294, %s582_s20   ;;  %s582_s20 = sphi %s621_s20, %s17_s20   ;;  %s578_s19 = sphi %s619_s19, %s743_s19   ;;  %s574_s18 = sphi %s617_s18, %s742_s18   ;;  %s570_s17 = sphi %s615_s17, %s741_s17   ;;  %s566_s16 = sphi %s613_s16, %s740_s16   ;;  %s562_s15 = sphi %s611_s15, %s739_s15  }
   0x5   : > { %s26_s23 = sadd.s32 1, %s578_s19  ;;  %s144_s24 = sadd.s32 1, %s570_s17 }
   0x6   : > { %p27_p0 = scmp.ge.s32.totalorder %s26_s23, 2  ;;  %p154_p1 = scmp.ne.s32.totalorder %s570_s17, %s566_s16 }
   0x7   : > { %p155_p2 = scmp.eq.s32.totalorder %s432_s21, 1  ;;  %p160_p3 = scmp.ne.s32.totalorder %s566_s16, %s562_s15 }
   0x8   : > { %s745_s23 = smov (%p27_p0, %s26_s23), 0  ;;  %p161_p5 = scmp.eq.s32.totalorder %s433_s22, 1 }
   0x9   : > { %p651_p4 = por %p155_p2, %p154_p1  ;;  %s140_s26 = ssub.s32 %s578_s19, %s745_s23 }
   0xa   : > { %p439_p6 = scmp.ge.s32.totalorder %s582_s20, 1  ;;  %p142_p7 = scmp.eq.s32.totalorder %s140_s26, 0 }
   0xb   : > { %p658_p8 = por %p161_p5, %p160_p3  ;;  %p211_p9 = scmp.lt.s32.totalorder %s582_s20, 3 }
   0xc   : > { %s664_s28 = scalar_select %p142_p7, %s570_s17, %s144_s24  }
   0xd   : > { %p212_p10 = pnand %p439_p6, %p211_p9 }
   0xe   : > { %v273_v0 = vld [vmem:[%s733_s1] sm:$0xff] (!%p212_p10)  ;;  %v584_v2 = vmov (!%p212_p10), 0   ;;  %p254_p11 = scmp.lt.s32.totalorder (!%p212_p10), %s574_s18, 1  ;;  %s249_s14 = sand.u32 (!%p212_p10), 1, %s566_s16  }
   0xf   : > { %215 = sbr.rel (%p212_p10) target bundleno = 168 (0xa8), region = 36  ;;  %v288_v1 = vld [vmem:[%s735_s3] sm:$0xff] (!%p212_p10)  ;;  %502 = vset.pattern.permute.xlu0 (!%p212_p10), %v584_v2  ;;  %503 = vset.pattern.permute.xlu1 (!%p212_p10), %v584_v2  ;;  %s440_s21 = sshll.u32 (!%p212_p10), %s249_s14, 3 }
  0x10   : > { %276 = vperm.xlu0 (!%p212_p10), %502, %v273_v0   ;;  %291 = vperm.xlu1 (!%p212_p10), %503, %v288_v1   ;;  %v280_v3 = vld [vmem:[%s734_s2] sm:$0xff] (!%p212_p10)  ;;  %s443_s22 = sshll.u32 (!%p212_p10), %s574_s18, 7  ;;  %s251_s24 = scalar_lea.vmem (!%p212_p10), [#allocation2], %s440_s21 }
  0x11   : > { %s312_s26 = sshll.u32 (!%p212_p10), %s251_s24, 4  ;;  %s685_s5 = scalar_lea.hbm (!%p212_p10), %s736_s4, %s443_s22  ;;  %s687_s26 = int_to_ptr.vmem [resolvable:$true] %s312_s26 }
  0x12   : > { %s297_s6 = scalar_lea.sflag (!%p212_p10), [#allocation3], %s249_s14  ;;  %s504_s7 = scalar_lea.vmem (!%p212_p10), %s687_s26, 128 }
  0x13   : > { %p505_p12 = scmp.ne.s32.totalorder (!%p212_p10), %s687_s26, %s504_s7 }
  0x14   : > { %283 = vperm.xlu0 (!%p212_p10), %502, %v280_v3  }
  0x15   : > { %p506_p13 = pnand (!%p212_p10), %p505_p12, %p651_p4 }
  0x16   : > { %s255_s9 = scalar_select %p254_p11, %s574_s18, 1 }
  0x17   : > { %p507_p0 = pneg %p506_p13  ;;  %s585_s18 = smov [#allocation2]  }
  0x18   : > { %s441_s10 = sshll.u32 %s255_s9, 3  ;;  %s508_s8 = sshll.u32 %s585_s18, 4  ;;  %s509_s8 = int_to_ptr.vmem [resolvable:$false] %s508_s8 }
  0x19   : > { %s259_s13 = scalar_lea.vmem %s732_s0, %s441_s10  ;;  %s510_s9 = scalar_lea.vmem %s509_s8, 256 }
  0x1a   : > { %v272_v5 = vld [vmem:[%s259_s13] sm:$0xff]  ;;  %p511_p1 = scmp.lt.s32.totalorder %s687_s26, %s509_s8  ;;  %p512_p2 = scmp.lt.s32.totalorder %s510_s9, %s504_s7 }
  0x1c   : > { %p513_p3 = por %p512_p2, %p511_p1 }
  0x1e   : > { %p514_p5 = pnand %p513_p3, %p507_p0 }
  0x8f   : > { %v277_v4 = vpop.permute.xlu0 %276  ;;  %v292_v9 = vpop.permute.xlu1 %291 }
  0x90   : > { %v279_v6 = vmul.f32 %v277_v4, %v272_v5 }
  0x93   : > { %v284_v7 = vpop.permute.xlu0 %283 }
  0x94   : > { %v286_v8 = vadd.f32 %v284_v7, %v279_v6 }
  0x96   : > { %v287_v10 = vmax.f32 %v286_v8, 0.0 }
  0x98   : > { %v294_v11 = vsub.f32 %v287_v10, %v292_v9 }
  0x9a   : > { %295 = vst [vmem:[%s251_s24] sm:$0xff] %v294_v11 }
  0x9b   : > { %517 = shalt.err (!%p514_p5)
}
  0x9c   : > { %s518_s10 = scalar_lea.hbm %s685_s5, 128  ;;  %s522_s13 = scalar_lea.hbm %s736_s4, 256 }
  0x9d   : > { %p519_p6 = scmp.ne.s32.totalorder %s685_s5, %s518_s10  ;;  %p523_p10 = scmp.lt.u32.totalorder %s685_s5, %s736_s4 }
  0x9e   : > { %p524_p11 = scmp.lt.u32.totalorder %s522_s13, %s518_s10  ;;  %p526_p13 = scmp.lt.u32.totalorder %s518_s10, %s685_s5 }
  0x9f   : > { %p520_p7 = pnand %p519_p6, %p651_p4 }
  0xa0   : > { %p525_p12 = por %p524_p11, %p523_p10 }
  0xa1   : > { %p521_p9 = pneg %p520_p7 }
  0xa2   : > { %p527_p0 = por %p526_p13, %p525_p12 }
  0xa4   : > { %p528_p1 = pnand %p527_p0, %p521_p9 }
  0xa6   : > { %531 = shalt.err (!%p528_p1)
}
  0xa7   : > { %446 = dma.vmem_to_hbm [thread:$0]  (%p651_p4), %s687_s26, 128, %s685_s5, %s297_s6  }
  0xa8 PF: > { %p452_p2 = scmp.ge.s32.totalorder %s582_s20, 2  ;;  %s324_s22 = sand.u32 1, %s562_s15  }
  0xa9   : > { %s325_s24 = scalar_lea.sflag [#allocation3], %s324_s22 }
  0xaa   : > { %p449_p3 = pnand %p452_p2, %p658_p8 }
  0xac   : > { %557 = dma.done.wait (!%p449_p3), %s325_s24, 128  }
  0xad   : > { %559 = vsyncadd (!%p449_p3), %s325_s24, 4294967168  ;;  %s17_s20 = sadd.s32 1, %s582_s20   ;;  %s739_s15 = smov %s566_s16 }
  0xae   : > { %p14_p5 = scmp.ge.s32.totalorder %s17_s20, 4   ;;  %s740_s16 = smov %s570_s17 }
  0xaf   : > { %s741_s17 = smov %s664_s28  ;;  %s742_s18 = smov %s578_s19 }
  0xb0   : > { %s743_s19 = smov %s745_s23  ;;  %16 = sbr.rel (!%p14_p5) target bundleno = 4 (0x4), region = 80 }
  0xb7   :  { %330 = vsyncpa [#allocation3], 1 }
  0xb8   :  { %332 = vsyncpa [#allocation3 + $0x1], 1 }

</bundles_post_ra>
